<compile_context>
chip_gen: v7x
topology: tpu7x:2x2x1
jax: 0.10.0
libtpu: 0.0.40
codegen_flags: <defaults>
</compile_context>

<pallas_src>
import math

import jax
import jax.numpy as jnp
from jax import lax
from jax.experimental import pallas as pl
from jax.experimental.pallas import tpu as pltpu


def _cdiv(a, b):
    return -(-a // b)


def _round_up(x, m):
    return _cdiv(x, m) * m


def _balanced_tile(length, target, align):
    """Aligned tile size that covers `length` with minimal tail padding."""
    ntiles = max(1, _cdiv(length, max(target, align)))
    return _round_up(_cdiv(length, ntiles), align)


def _trilinear_kernel(lhs_ref, t1_ref, s0_ref, o_ref):
    # lhs_ref: (1, TM, Hp) bf16 = (t0*dot_w + w1)  (t1-projection pre-folded)
    # t1_ref : (1, TN, Hp) bf16
    # s0_ref : (1, TM, 1)  f32  = t0 @ w0^T
    # o_ref  : (1, TM, TN)
    acc = lax.dot_general(
        lhs_ref[0], t1_ref[0],
        dimension_numbers=(((1,), (1,)), ((), ())),   # NT form, no explicit .T
        preferred_element_type=jnp.float32,
    )                                                 # (TM, TN) f32
    o_ref[0] = (acc + s0_ref[0]).astype(o_ref.dtype)


def trilinear(t0, t1, w0, w1, dot_w, bias=None, *,
              tile_m=512, tile_n=1024, out_dtype=jnp.float32):
    """t0: (B, L0, H), t1: (B, L1, H); w0, w1: (1, H); dot_w: (1,1,H) or (1,H).

    Returns (B, L0, L1) in `out_dtype` (default float32).
    """
    B, L0, H = t0.shape
    _, L1, _ = t1.shape

    w0 = jnp.reshape(w0, (H,)).astype(jnp.float32)
    w1 = jnp.reshape(w1, (H,)).astype(jnp.float32)
    dw = jnp.reshape(dot_w, (H,)).astype(jnp.float32)

    t0f = t0.astype(jnp.float32)
    t1f = t1.astype(jnp.float32)

    # (b,i)-invariant work folded into the wrapper (no per-step recompute, and
    # the t0-derived DMA stream becomes bf16):
    #   (lhs @ t1^T) = (t0*dw)@t1^T + row-broadcast(w1 @ t1^T)
    lhs = (t0f * dw + w1).astype(jnp.bfloat16)                       # (B, L0, H)
    s0 = jnp.sum(t0f * w0, axis=-1, keepdims=True)                   # (B, L0, 1) f32

    Hp = _round_up(H, 128)
    out_bytes = jnp.dtype(out_dtype).itemsize

    # Generation-aware VMEM budget (64 MiB physical on v7x, 128 MiB v5e/v6e).
    try:
        vmem_cap = int(pltpu.get_tpu_info().vmem_capacity_bytes)
    except Exception:  # pragma: no cover - conservative fallback
        vmem_cap = 64 * 1024 * 1024
    budget = int(0.55 * vmem_cap)

    def est(tm, tn):
        return (
            2 * (tm * Hp * 2 + tn * Hp * 2 + tm * 4)   # double-buffered bf16 inputs + s0
            + 2 * tm * tn * out_bytes                  # double-buffered output tile
            + tm * tn * 4                              # f32 accumulator temp
            + 64 * 1024                                # small-buffer / internal slop
        )

    # Balanced tiles (minimal tail padding), shrunk until they fit the budget.
    tm_t, tn_t = tile_m, tile_n
    while True:
        TM = _balanced_tile(L0, tm_t, 8)       # sublane-aligned row tile
        TN = _balanced_tile(L1, tn_t, 128)     # lane-dense output tile
        if est(TM, TN) <= budget or (TM <= 8 and TN <= 128):
            break
        if TN > 128 and (TN >= TM or tm_t <= 8):
            tn_t = max(128, tn_t // 2)
        else:
            tm_t = max(8, tm_t // 2)

    L0p = _round_up(L0, TM)
    L1p = _round_up(L1, TN)
    NI, NJ = L0p // TM, L1p // TN

    # Zero-padded, dtype-converted kernel inputs. NOTE: padded OUTPUT rows/cols
    # are not exactly zero (s0 broadcasts over padded j), so the final
    # [:, :L0, :L1] slice below is load-bearing.
    lhs_p = jnp.zeros((B, L0p, Hp), jnp.bfloat16).at[:, :L0, :H].set(lhs)
    t1_p = jnp.zeros((B, L1p, Hp), jnp.bfloat16).at[:, :L1, :H].set(
        t1f.astype(jnp.bfloat16))
    s0_p = jnp.zeros((B, L0p, 1), jnp.float32).at[:, :L0, :].set(s0)

    vmem_limit = int(min(0.9 * vmem_cap,
                         max(1.5 * est(TM, TN), 16 * 1024 * 1024)))

    # Grid: i innermost so the larger t1 tile stays VMEM-resident across the
    # inner loop; only the smaller lhs/s0 tiles change per step. All axes are
    # independent -> "parallel" everywhere (megacore sharding on v7x).
    out_p = pl.pallas_call(
        _trilinear_kernel,
        out_shape=jax.ShapeDtypeStruct((B, L0p, L1p), out_dtype),
        grid_spec=pltpu.PrefetchScalarGridSpec(
            num_scalar_prefetch=0,
            grid=(B, NJ, NI),
            in_specs=[
                pl.BlockSpec((1, TM, Hp), lambda b, j, i: (b, i, 0)),
                pl.BlockSpec((1, TN, Hp), lambda b, j, i: (b, j, 0)),
                pl.BlockSpec((1, TM, 1), lambda b, j, i: (b, i, 0)),
            ],
            out_specs=pl.BlockSpec((1, TM, TN), lambda b, j, i: (b, i, j)),
        ),
        compiler_params=pltpu.CompilerParams(
            dimension_semantics=("parallel", "parallel", "parallel"),
            vmem_limit_bytes=vmem_limit,
        ),
    )(lhs_p, t1_p, s0_p)

    out = out_p[:, :L0, :L1]
    if bias is not None:
        # bias=True path of the module: a single learnable scalar added to out.
        out = out + jnp.reshape(bias, ()).astype(out.dtype)
    return out


def xavier_uniform(key, shape, fan_in, fan_out, dtype=jnp.float32):
    bound = math.sqrt(6.0 / (fan_in + fan_out))
    return jax.random.uniform(key, shape, dtype=dtype, minval=-bound, maxval=bound)


if __name__ == "__main__":
    B, L0, L1, H = 2, 8, 8, 32

    key = jax.random.PRNGKey(0)
    k_t0, k_t1, k_w0, k_w1, k_dw = jax.random.split(key, 5)

    t0 = jax.random.normal(k_t0, (B, L0, H), dtype=jnp.float32)
    t1 = jax.random.normal(k_t1, (B, L1, H), dtype=jnp.float32)

    # nn.Linear(H, 1, bias=False).weight has shape (1, H); xavier fan_in=H, fan_out=1
    w0 = xavier_uniform(k_w0, (1, H), fan_in=H, fan_out=1)
    w1 = xavier_uniform(k_w1, (1, H), fan_in=H, fan_out=1)
    # dot_w has shape (1, 1, H) in torch; xavier fan_in=H, fan_out=H.
    dot_w = xavier_uniform(k_dw, (1, 1, H), fan_in=H, fan_out=H)

    out = trilinear(t0, t1, w0, w1, dot_w)
    out = jax.block_until_ready(out)

    # Reference in plain JAX (f32 everywhere).
    ref = (
        jnp.einsum("bih,bjh->bij", t0 * dot_w.reshape(1, 1, H), t1)
        + jnp.einsum("bih,oh->bio", t0, w0)    # (B, L0, 1)
        + jnp.einsum("bjh,oh->boj", t1, w1)    # (B, 1, L1)
    )
    assert out.shape == (B, L0, L1)
    max_err = float(jnp.max(jnp.abs(out - ref)))
    # bf16 MXU operands (incl. folded w1 term) with f32 accumulation.
    assert jnp.allclose(out, ref, atol=3e-2, rtol=3e-2), f"max_err={max_err}"

    print("KERNEL_OK")
</pallas_src>

<mosaic_0001>
module attributes {stable_mosaic.version = 11 : i64} {
  func.func @_trilinear_kernel(%arg0: i32, %arg1: i32, %arg2: i32, %arg3: memref<1x8x128xbf16, #tpu.memory_space<vmem>>, %arg4: memref<1x128x128xbf16, #tpu.memory_space<vmem>>, %arg5: memref<1x8x1xf32, #tpu.memory_space<vmem>>, %arg6: memref<1x8x128xf32, #tpu.memory_space<vmem>>) attributes {dimension_semantics = [#tpu.dimension_semantics<parallel>, #tpu.dimension_semantics<parallel>, #tpu.dimension_semantics<parallel>], iteration_bounds = array<i64: 2, 1, 1>, scalar_prefetch = 0 : i64, scratch_operands = 0 : i64, tpu.core_type = #tpu.core_type<tc>, window_params = [{transform_indices = @transform_0, window_bounds = array<i64: 1, 8, 128>}, {transform_indices = @transform_1, window_bounds = array<i64: 1, 128, 128>}, {transform_indices = @transform_2, window_bounds = array<i64: 1, 8, 1>}, {transform_indices = @transform_3, window_bounds = array<i64: 1, 8, 128>}]} {
    %c0 = arith.constant 0 : index
    %c0_0 = arith.constant 0 : index
    %c0_1 = arith.constant 0 : index
    %0 = vector.load %arg3[%c0, %c0_0, %c0_1] : memref<1x8x128xbf16, #tpu.memory_space<vmem>>, vector<1x8x128xbf16>
    %1 = vector.shape_cast %0 : vector<1x8x128xbf16> to vector<8x128xbf16>
    %c0_2 = arith.constant 0 : index
    %c0_3 = arith.constant 0 : index
    %c0_4 = arith.constant 0 : index
    %2 = vector.load %arg4[%c0_2, %c0_3, %c0_4] : memref<1x128x128xbf16, #tpu.memory_space<vmem>>, vector<1x128x128xbf16>
    %3 = vector.shape_cast %2 : vector<1x128x128xbf16> to vector<128x128xbf16>
    %cst = arith.constant dense<0.000000e+00> : vector<8x128xf32>
    %4 = tpu.matmul %1, %3, %cst {dimension_numbers = #tpu.dot_dimension_numbers<[1], [1], [0], [0], [0, 0, 1, 0], [], []>} : vector<8x128xbf16>, vector<128x128xbf16>, vector<8x128xf32> -> vector<8x128xf32>
    %c0_5 = arith.constant 0 : index
    %c0_6 = arith.constant 0 : index
    %c0_7 = arith.constant 0 : index
    %5 = vector.load %arg5[%c0_5, %c0_6, %c0_7] : memref<1x8x1xf32, #tpu.memory_space<vmem>>, vector<1x8x1xf32>
    %6 = vector.shape_cast %5 : vector<1x8x1xf32> to vector<8x1xf32>
    %7 = vector.broadcast %6 : vector<8x1xf32> to vector<8x128xf32>
    %8 = arith.addf %4, %7 : vector<8x128xf32>
    %c0_8 = arith.constant 0 : index
    %c0_9 = arith.constant 0 : index
    %c0_10 = arith.constant 0 : index
    %9 = vector.load %arg6[%c0_8, %c0_9, %c0_10] : memref<1x8x128xf32, #tpu.memory_space<vmem>>, vector<1x8x128xf32>
    %10 = vector.shape_cast %9 : vector<1x8x128xf32> to vector<8x128xf32>
    %11 = vector.shape_cast %8 : vector<8x128xf32> to vector<1x8x128xf32>
    tpu.vector_store %arg6[%c0_8, %c0_9, %c0_10], %11 {strides = array<i32>} : memref<1x8x128xf32, #tpu.memory_space<vmem>>, vector<1x8x128xf32>,
    return
  }
  func.func @transform_0(%arg0: i32, %arg1: i32, %arg2: i32) -> (i32, i32, i32) {
    %c0_i32 = arith.constant 0 : i32
    %c0_i32_0 = arith.constant 0 : i32
    return %arg0, %arg2, %c0_i32 : i32, i32, i32
  }
  func.func @transform_1(%arg0: i32, %arg1: i32, %arg2: i32) -> (i32, i32, i32) {
    %c0_i32 = arith.constant 0 : i32
    %c0_i32_0 = arith.constant 0 : i32
    return %arg0, %arg1, %c0_i32 : i32, i32, i32
  }
  func.func @transform_2(%arg0: i32, %arg1: i32, %arg2: i32) -> (i32, i32, i32) {
    %c0_i32 = arith.constant 0 : i32
    %c0_i32_0 = arith.constant 0 : i32
    return %arg0, %arg2, %c0_i32 : i32, i32, i32
  }
  func.func @transform_3(%arg0: i32, %arg1: i32, %arg2: i32) -> (i32, i32, i32) {
    %c0_i32 = arith.constant 0 : i32
    return %arg0, %arg2, %arg1 : i32, i32, i32
  }
}

</mosaic_0001>

<bundles_post_ra>
// kernel: tpu_custom_call.1
= control target key start
LH: loop header
LB: loop body
LE: loop exit
PB: predicated region body
PF: predicated region fallthrough
CT: control target
= control target key end

     0   :  { %8 = vsyncpa [#allocation3], 0  ;;  %s985_s0 = inlined_call_operand.vmem [shape: bf16[2,8,128], index: 0, kind: input, shape index: {}]   ;;  %s986_s1 = inlined_call_operand.hbm [shape: bf16[2,128,128], index: 1, kind: input, shape index: {}]   ;;  %s987_s2 = inlined_call_operand.vmem [shape: f32[2,8,1], index: 2, kind: input, shape index: {}]   ;;  %s988_s3 = inlined_call_operand.hbm [shape: f32[2,8,128], index: 3, kind: output, shape index: {}]  }
   0x1   :  { %10 = vsyncpa [#allocation3 + $0x1], 0 }
   0x2   :  { %11 = vsyncpa [#allocation4], 0 }
   0x3   :  { %13 = vsyncpa [#allocation4 + $0x1], 0  ;;  %s789_s12 = smov 0   ;;  %s791_s13 = smov 0  }
   0x4   :  { %s793_s14 = smov 0   ;;  %s795_s15 = smov 0  }
   0x5   :  { %s797_s16 = smov 0   ;;  %s799_s17 = smov 0  }
   0x6 LB: > { %s518_s18 = sadd.s32 4294967295, %s760_s17   ;;  %s519_s19 = sadd.s32 4294967294, %s760_s17   ;;  %s760_s17 = sphi %s799_s17, %s19_s17   ;;  %s756_s16 = sphi %s797_s16, %s1003_s16   ;;  %s752_s15 = sphi %s795_s15, %s1002_s15   ;;  %s748_s14 = sphi %s793_s14, %s1001_s14   ;;  %s744_s13 = sphi %s791_s13, %s1000_s13   ;;  %s740_s12 = sphi %s789_s12, %s999_s12  }
   0x7   : > { %s38_s20 = sadd.s32 1, %s756_s16  ;;  %s75_s21 = sadd.s32 1, %s748_s14 }
   0x8   : > { %p40_p0 = scmp.ge.s32.totalorder %s38_s20, 2  ;;  %p82_p1 = scmp.ne.s32.totalorder %s748_s14, %s744_s13 }
   0x9   : > { %p83_p2 = scmp.eq.s32.totalorder %s760_s17, 0  ;;  %p88_p3 = scmp.ne.s32.totalorder %s744_s13, %s740_s12 }
   0xa   : > { %s1005_s20 = smov (%p40_p0, %s38_s20), 0  ;;  %p89_p5 = scmp.eq.s32.totalorder %s518_s18, 0 }
   0xb   : > { %p830_p4 = por %p83_p2, %p82_p1  ;;  %s70_s23 = ssub.s32 %s756_s16, %s1005_s20 }
   0xc   : > { %p144_p6 = scmp.eq.s32.totalorder %s518_s18, 1  ;;  %p73_p7 = scmp.eq.s32.totalorder %s70_s23, 0 }
   0xd   : > { %p836_p8 = por %p89_p5, %p88_p3  ;;  %p150_p10 = scmp.eq.s32.totalorder %s519_s19, 1 }
   0xe   : > { %p840_p9 = por %p144_p6, %p82_p1  ;;  %p584_p13 = scmp.lt.s32.totalorder %s760_s17, 2 }
   0xf   : > { %s845_s26 = scalar_select %p73_p7, %s748_s14, %s75_s21  }
  0x10   : > { %s992_s25 = scalar_select %p840_p9, 1, 0 }
  0x11   : > { %p847_p11 = por %p150_p10, %p88_p3  ;;  %s180_s28 = sand.u32 1, %s748_s14  }
  0x12   : > { %s522_s29 = sshll.u32 %s180_s28, 6  ;;  %s542_s30 = sshll.u32 %s756_s16, 10 }
  0x13   : > { %s993_s27 = scalar_select %p847_p11, 1, 0 }
  0x14   : > { %s858_s6 = scalar_lea.hbm %s986_s1, %s542_s30  ;;  %s184_s7 = scalar_lea.vmem [#allocation2], %s522_s29 }
  0x15   : > { %s193_s8 = sshll.u32 %s184_s7, 4  ;;  %p864_p0 = pnand %p584_p13, %p830_p4  ;;  %s860_s8 = int_to_ptr.vmem [resolvable:$true] %s193_s8 }
  0x16   : > { %s869_s10 = scalar_lea.sflag [#allocation3], %s180_s28  ;;  %s648_s11 = scalar_lea.hbm %s858_s6, 1024 }
  0x17   : > { %p649_p2 = scmp.ne.s32.totalorder %s858_s6, %s648_s11  ;;  %p650_p3 = pneg %p864_p0 }
  0x18   : > { %s653_s21 = scalar_lea.hbm %s986_s1, 2048  ;;  %p654_p4 = scmp.lt.u32.totalorder %s858_s6, %s986_s1 }
  0x19   : > { %p651_p5 = pnand %p650_p3, %p649_p2  ;;  %p655_p7 = scmp.lt.u32.totalorder %s653_s21, %s648_s11 }
  0x1a   : > { %p657_p13 = scmp.lt.u32.totalorder %s648_s11, %s858_s6 }
  0x1b   : > { %p652_p6 = pneg %p651_p5  ;;  %p656_p10 = por %p655_p7, %p654_p4 }
  0x1d   : > { %p658_p12 = por %p657_p13, %p656_p10 }
  0x1f   : > { %p659_p1 = pnand %p658_p12, %p652_p6 }
  0x21   : > { %662 = shalt.err (!%p659_p1)
}
  0x22   : > { %s663_s28 = scalar_lea.vmem %s860_s8, 1024  ;;  %s762_s29 = smov [#allocation2]  }
  0x23   : > { %p664_p2 = scmp.ne.s32.totalorder %s860_s8, %s663_s28  ;;  %s668_s30 = sshll.u32 %s762_s29, 4  ;;  %s669_s30 = int_to_ptr.vmem [resolvable:$false] %s668_s30 }
  0x24   : > { %s670_s4 = scalar_lea.vmem %s669_s30, 2048  ;;  %p671_p9 = scmp.lt.s32.totalorder %s860_s8, %s669_s30 }
  0x25   : > { %p666_p5 = pnand %p664_p2, %p650_p3  ;;  %p672_p4 = scmp.lt.s32.totalorder %s670_s4, %s663_s28 }
  0x27   : > { %p667_p11 = pneg %p666_p5  ;;  %p673_p7 = por %p672_p4, %p671_p9 }
  0x29   : > { %p674_p10 = pnand %p673_p7, %p667_p11 }
  0x2b   : > { %677 = shalt.err (!%p674_p10)
}
  0x2c   : > { %s763_s5 = smov 64   ;;  %s764_s7 = smov 4  }
  0x2d   : > { %579 = dma.hbm_to_vmem [thread:$0]  (!%p864_p0), %s858_s6, 1024, %s860_s8, %s869_s10, %s763_s5, %s763_s5, %s764_s7  }
  0x2e   : > { %p211_p12 = scmp.lt.s32.totalorder %s760_s17, 3  ;;  %p995_p1 = scmp.ge.s32.totalorder %s760_s17, 1 }
  0x30   : > { %p212_p3 = pnand %p995_p1, %p211_p12 }
  0x31   : > { %s901_s11 = sand.u32 (!%p212_p3), 1, %s744_s13  }
  0x32   : > { %215 = sbr.rel (%p212_p3) target bundleno = 351 (0x15f), region = 32  ;;  %s526_s18 = sshll.u32 (!%p212_p3), %s901_s11, 6 }
  0x33   : > { %s218_s19 = scalar_lea.sflag (!%p212_p3), [#allocation3], %s901_s11  ;;  %s905_s21 = scalar_lea.vmem (!%p212_p3), [#allocation2], %s526_s18 }
  0x39   : > { %731 = dma.done.wait (%p836_p8), %s218_s19, 1024  }
  0x3a   : > { %733 = vsyncadd (%p836_p8), %s218_s19, 4294966272  ;;  %v765_v0 = vmov 0.0   ;;  %vm766_vm0 = vmmov 0   ;;  %v767_v1 = vmov 0   ;;  %p258_p9 = scmp.lt.s32.totalorder %s752_s15, 1  ;;  %v640_v2 = vld [vmem:[%s905_s21] sm:$0xff]  }
  0x3b   : > { %552 = vmatprep.subr.bf16.mxu0 %v765_v0  ;;  %568 = vmatprep.mubr.msk.bf16.mxu0 %vm766_vm0, %v765_v0  ;;  %v641_v3 = vld [vmem:[%s905_s21 + $0x8] sm:$0xff]   ;;  %v642_v5 = vld [vmem:[%s905_s21 + $0x10] sm:$0xff]   ;;  %v643_v6 = vld [vmem:[%s905_s21 + $0x18] sm:$0xff]   ;;  %s527_s30 = sshll.u32 %s901_s11, 3  ;;  %s539_s4 = sshll.u32 %s752_s15, 7 }
  0x3c   : > { %639 = vset.pattern.permute.xlu0 %v767_v1  ;;  %s914_s6 = scalar_select %p258_p9, %s752_s15, 1  ;;  %553 = vmatpush3.bf16.xpose.msra.mxu0 %v640_v2  ;;  %v644_v7 = vld [vmem:[%s905_s21 + $0x20] sm:$0xff]   ;;  %v645_v8 = vld [vmem:[%s905_s21 + $0x28] sm:$0xff]   ;;  %v646_v9 = vld [vmem:[%s905_s21 + $0x30] sm:$0xff]  }
  0x3d   : > { %554 = vmatprep.subr.bf16.mxu0 %v765_v0  ;;  %v647_v10 = vld [vmem:[%s905_s21 + $0x38] sm:$0xff]   ;;  %s257_s5 = scalar_lea.vmem [#allocation5], %s527_s30  ;;  %s936_s21 = scalar_lea.hbm %s988_s3, %s539_s4 }
  0x3e   : > { %s529_s24 = sshll.u32 %s914_s6, 3  ;;  %s528_s22 = sshll.u32 %s914_s6, 2 }
  0x3f   : > { %s272_s10 = scalar_lea.vmem %s987_s2, %s529_s24  ;;  %s264_s29 = scalar_lea.vmem %s985_s0, %s528_s22 }
  0x40   : > { %v291_v4 = vld [vmem:[%s272_s10] sm:$0xff]  ;;  %s402_s7 = sshll.u32 %s257_s5, 4  ;;  %s387_s6 = scalar_lea.sflag [#allocation4], %s901_s11  ;;  %s938_s7 = int_to_ptr.vmem [resolvable:$true] %s402_s7 }
  0x41   : > { %294 = vperm.xlu0 %639, %v291_v4   ;;  %v274_v11 = vld [vmem:[%s264_s29] sm:$0xf]  ;;  %s678_s15 = scalar_lea.vmem %s938_s7, 128  ;;  %p996_p11 = scmp.ne.s32.totalorder %s992_s25, 0 }
  0x42   : > { %p679_p8 = scmp.ne.s32.totalorder %s938_s7, %s678_s15  ;;  %s768_s24 = smov [#allocation5]  }
  0x43   : > { %s682_s8 = sshll.u32 %s768_s24, 4  ;;  %s683_s8 = int_to_ptr.vmem [resolvable:$false] %s682_s8 }
  0x44   : > { %555 = vmatpush3.bf16.xpose.msra.mxu0 %v641_v3  ;;  %p680_p0 = pnand %p679_p8, %p996_p11  ;;  %s684_s9 = scalar_lea.vmem %s683_s8, 256 }
  0x45   : > { %556 = vmatprep.subr.bf16.mxu0 %v765_v0  ;;  %p685_p13 = scmp.lt.s32.totalorder %s938_s7, %s683_s8  ;;  %p686_p2 = scmp.lt.s32.totalorder %s684_s9, %s678_s15 }
  0x46   : > { %p681_p6 = pneg %p680_p0 }
  0x47   : > { %p687_p5 = por %p686_p2, %p685_p13 }
  0x49   : > { %p688_p4 = pnand %p687_p5, %p681_p6 }
  0x4c   : > { %557 = vmatpush3.bf16.xpose.msra.mxu0 %v642_v5 }
  0x4d   : > { %558 = vmatprep.subr.bf16.mxu0 %v765_v0 }
  0x54   : > { %559 = vmatpush3.bf16.xpose.msra.mxu0 %v643_v6 }
  0x55   : > { %560 = vmatprep.subr.bf16.mxu0 %v765_v0 }
  0x5c   : > { %561 = vmatpush3.bf16.xpose.msra.mxu0 %v644_v7 }
  0x5d   : > { %562 = vmatprep.subr.bf16.mxu0 %v765_v0 }
  0x64   : > { %563 = vmatpush3.bf16.xpose.msra.mxu0 %v645_v8 }
  0x65   : > { %564 = vmatprep.subr.bf16.mxu0 %v765_v0 }
  0x6c   : > { %565 = vmatpush3.bf16.xpose.msra.mxu0 %v646_v9 }
  0x6d   : > { %566 = vmatprep.subr.bf16.mxu0 %v765_v0 }
  0x74   : > { %567 = vmatpush3.bf16.xpose.msra.mxu0 %v647_v10 }
  0x7b   : > { %569 = vmatmul.mubr.bf16.vlgmr.msra.gmra.mrb[0].mxu0 %v274_v11 }
  0xc0   : > { %v295_v12 = vpop.permute.xlu0 %294 }
 0x14e   : > { %v379_v13 = vpop.f32.mrb[0].mxu0 }
 0x14f   : > { %v380_v14 = vadd.f32 %v379_v13, %v295_v12  ;;  %v570_v15 = vpop.f32.mrb[1].mxu0 }
 0x150   : > { %v382_v16 = vpop.f32.mrb[2].mxu0 }
 0x151   : > { %385 = vst [vmem:[%s257_s5] sm:$0xff] %v380_v14  ;;  %v571_v17 = vpop.f32.mrb[3].mxu0 }
 0x152   : > { %691 = shalt.err (!%p688_p4)
}
 0x153   : > { %s692_s11 = scalar_lea.hbm %s936_s21, 128  ;;  %s696_s23 = scalar_lea.hbm %s988_s3, 256 }
 0x154   : > { %p693_p7 = scmp.ne.s32.totalorder %s936_s21, %s692_s11  ;;  %p697_p1 = scmp.lt.u32.totalorder %s936_s21, %s988_s3 }
 0x155   : > { %p698_p3 = scmp.lt.u32.totalorder %s696_s23, %s692_s11  ;;  %p700_p8 = scmp.lt.u32.totalorder %s692_s11, %s936_s21 }
 0x156   : > { %p694_p10 = pnand %p693_p7, %p996_p11 }
 0x157   : > { %p699_p9 = por %p698_p3, %p697_p1 }
 0x158   : > { %p695_p12 = pneg %p694_p10 }
 0x159   : > { %p701_p0 = por %p700_p8, %p699_p9 }
 0x15b   : > { %p702_p6 = pnand %p701_p0, %p695_p12 }
 0x15d   : > { %705 = shalt.err (!%p702_p6)
}
 0x15e   : > { %574 = dma.vmem_to_hbm [thread:$0]  (%p996_p11), %s938_s7, 128, %s936_s21, %s387_s6  }
 0x15f PF: > { %s414_s30 = sand.u32 1, %s740_s12   ;;  %p997_p13 = scmp.ne.s32.totalorder %s993_s27, 0 }
 0x160   : > { %p998_p2 = scmp.ge.s32.totalorder %s760_s17, 2  ;;  %s415_s4 = scalar_lea.sflag [#allocation4], %s414_s30 }
 0x162   : > { %p581_p5 = pnand %p998_p2, %p997_p13 }
 0x164   : > { %735 = dma.done.wait (!%p581_p5), %s415_s4, 128  }
 0x165   : > { %737 = vsyncadd (!%p581_p5), %s415_s4, 4294967168  ;;  %s19_s17 = sadd.s32 1, %s760_s17   ;;  %s999_s12 = smov %s744_s13 }
 0x166   : > { %p16_p4 = scmp.ge.s32.totalorder %s19_s17, 4   ;;  %s1000_s13 = smov %s748_s14 }
 0x167   : > { %s1001_s14 = smov %s845_s26  ;;  %s1002_s15 = smov %s756_s16 }
 0x168   : > { %s1003_s16 = smov %s1005_s20  ;;  %18 = sbr.rel (!%p16_p4) target bundleno = 6 (0x6), region = 83 }
 0x16f   :  { %420 = vsyncpa [#allocation3], 1 }
 0x170   :  { %422 = vsyncpa [#allocation3 + $0x1], 1 }
 0x171   :  { %423 = vsyncpa [#allocation4], 1 }
 0x172   :  { %425 = vsyncpa [#allocation4 + $0x1], 1 }

</bundles_post_ra>
